<compile_context>
chip_gen: v6e
topology: v6e:2x2x1
jax: 0.10.0
libtpu: 0.0.40
codegen_flags: <defaults>
</compile_context>

<pallas_src>
import functools

import jax
import jax.numpy as jnp
from jax import lax
from jax.experimental import pallas as pl
from jax.experimental.pallas import tpu as pltpu


def _round_up(x, m):
    return ((x + m - 1) // m) * m


def _residual_block_kernel(*refs, t_rows, l_out, cin_p, has_downsample):
    if has_downsample:
        (xcol_ref, w1_ref, w2_ref, wd_ref, b1_ref, b2_ref, bd_ref, o_ref) = refs
    else:
        (xcol_ref, w1_ref, w2_ref, b1_ref, b2_ref, o_ref) = refs
        wd_ref = bd_ref = None

    T = t_rows
    # One L-tile of im2col'd x, including the +-1 conv2 halo rows: (T+2, 3*Cin_p).
    xcol = xcol_ref[0, 0]

    # conv1 (single im2col matmul, BN1 scale folded into w1) + shift + ReLU; f32 accumulate.
    h = jnp.dot(xcol, w1_ref[...], preferred_element_type=jnp.float32)
    h = jnp.maximum(h + b1_ref[...], 0.0)

    # conv2's zero padding must be zero *h*, not "h computed from zero x" (the folded BN
    # shift makes those differ), so mask halo rows whose global index is outside [0, L_out).
    t = pl.program_id(1)
    row = t * T - 1 + lax.broadcasted_iota(jnp.int32, (T + 2, 1), 0)
    h = jnp.where((row >= 0) & (row < l_out), h, 0.0)
    h_op = h.astype(xcol.dtype)

    # conv2 (k=3, stride=1, BN2 scale folded into w2): taps are value slices of h
    # (no hpad scratch store/reload); f32 accumulate.
    y = (jnp.dot(h_op[0:T], w2_ref[0], preferred_element_type=jnp.float32)
         + jnp.dot(h_op[1:T + 1], w2_ref[1], preferred_element_type=jnp.float32)
         + jnp.dot(h_op[2:T + 2], w2_ref[2], preferred_element_type=jnp.float32))
    y = y + b2_ref[...]

    # Identity branch: the centre tap x[o*stride] is the middle Cin_p lanes of xcol.
    ident_x = xcol[1:T + 1, cin_p:2 * cin_p]
    if has_downsample:
        ident = jnp.dot(ident_x, wd_ref[...],
                        preferred_element_type=jnp.float32) + bd_ref[...]
    else:
        ident = ident_x.astype(jnp.float32)

    o_ref[0] = jnp.maximum(y + ident, 0.0).astype(o_ref.dtype)


def residual_block_1d(x_ncw, params, *, stride, mxu_dtype=None, tile_rows=512):
    """Fused ResidualBlock1D forward (inference-mode BatchNorm).

    x_ncw: (N, Cin, L), PyTorch NCW layout.
    params (PyTorch layouts): w1 (Cout, Cin, 3), w2 (Cout, Cout, 3),
      bn1 / bn2 = (gamma, beta, running_mean, running_var);
      if stride != 1 or Cin != Cout also wd (Cout, Cin, 1) and bnd.
    Returns (N, Cout, L_out) with L_out = (L - 1) // stride + 1.
    """
    N, Cin, L = x_ncw.shape
    w1, w2 = params["w1"], params["w2"]
    Cout = w1.shape[0]
    has_downsample = (stride != 1) or (Cin != Cout)
    eps = 1e-5

    out_dtype = x_ncw.dtype
    op_dtype = jnp.dtype(mxu_dtype) if mxu_dtype is not None else jnp.dtype(out_dtype)

    Cin_p = _round_up(Cin, 128)
    Cout_p = _round_up(Cout, 128)
    L_out = (L - 1) // stride + 1
    T = _round_up(min(tile_rows, _round_up(L_out, 8)), 8)   # output rows per L tile
    nT = -(-L_out // T)
    L_out_p = nT * T

    # ----- BN folding (in f32) + weight layout + channel padding --------------------------
    def fold_bn(gamma, beta, mean, var):
        scale = gamma.astype(jnp.float32) / jnp.sqrt(var.astype(jnp.float32) + eps)
        shift = beta.astype(jnp.float32) - mean.astype(jnp.float32) * scale
        return scale, shift

    s1, b1 = fold_bn(*params["bn1"])
    s2, b2 = fold_bn(*params["bn2"])

    def prep_conv3(w, scale, cin_pad):                    # (Cout, Cin, 3) -> (3, cin_pad, Cout_p)
        wf = w.astype(jnp.float32) * scale[:, None, None]
        wf = jnp.transpose(wf, (2, 1, 0))
        return jnp.pad(wf, ((0, 0), (0, cin_pad - wf.shape[1]), (0, Cout_p - Cout)))

    def pad_shift(b):
        return jnp.pad(b, (0, Cout_p - Cout)).reshape(1, Cout_p).astype(jnp.float32)

    w1_2d = prep_conv3(w1, s1, Cin_p).reshape(3 * Cin_p, Cout_p).astype(op_dtype)
    w2_k = prep_conv3(w2, s2, Cout_p).astype(op_dtype)    # (3, Cout_p, Cout_p)
    b1_p, b2_p = pad_shift(b1), pad_shift(b2)

    if has_downsample:
        sd, bd = fold_bn(*params["bnd"])
        wdf = params["wd"][:, :, 0].astype(jnp.float32) * sd[:, None]   # (Cout, Cin)
        wd_p = jnp.pad(wdf.T, ((0, Cin_p - Cin), (0, Cout_p - Cout))).astype(op_dtype)
        bd_p = pad_shift(bd)

    # ----- wrapper-side im2col with per-tile conv2 halo (handles pad=1 and stride) --------
    # xcol[n, t, r, k*Cin_p + c] = x[n, (t*T - 1 + r)*stride - 1 + k, c]  (zeros out of range)
    x_nlc = jnp.transpose(x_ncw, (0, 2, 1))                             # (N, L, Cin) chan-last
    x_nlc = jnp.pad(x_nlc, ((0, 0), (0, 0), (0, Cin_p - Cin)))
    pad_lo = stride + 1
    pad_hi = L_out_p * stride + 2 - L
    x_pad = jnp.pad(x_nlc, ((0, 0), (pad_lo, pad_hi), (0, 0)))
    idx = (jnp.arange(nT, dtype=jnp.int32)[:, None, None] * (T * stride)
           + jnp.arange(T + 2, dtype=jnp.int32)[None, :, None] * stride
           + jnp.arange(3, dtype=jnp.int32)[None, None, :])             # (nT, T+2, 3)
    xcol = jnp.take(x_pad, idx.reshape(-1), axis=1)
    xcol = xcol.reshape(N, nT, T + 2, 3 * Cin_p).astype(op_dtype)

    # ----- pallas_call ---------------------------------------------------------------------
    def const(shape):
        return pl.BlockSpec(shape, lambda n, t: (0,) * len(shape))

    in_arrays = [xcol, w1_2d, w2_k]
    in_specs = [pl.BlockSpec((1, 1, T + 2, 3 * Cin_p), lambda n, t: (n, t, 0, 0)),
                const((3 * Cin_p, Cout_p)),
                const((3, Cout_p, Cout_p))]
    if has_downsample:
        in_arrays.append(wd_p)
        in_specs.append(const((Cin_p, Cout_p)))
    in_arrays += [b1_p, b2_p]
    in_specs += [const((1, Cout_p)), const((1, Cout_p))]
    if has_downsample:
        in_arrays.append(bd_p)
        in_specs.append(const((1, Cout_p)))

    # Explicit scoped-VMEM budget sized to the chosen tiles (capped for v7x's 64 MiB).
    itm = jnp.dtype(op_dtype).itemsize
    xcol_blk = (T + 2) * 3 * Cin_p * itm
    out_blk = T * Cout_p * jnp.dtype(out_dtype).itemsize
    w_bytes = (3 * Cin_p * Cout_p + 3 * Cout_p * Cout_p
               + (Cin_p * Cout_p if has_downsample else 0)) * itm
    vmem_est = 2 * (xcol_blk + out_blk + w_bytes) + (4 << 20)
    vmem_limit = int(max(32 << 20, min(vmem_est, 56 << 20)))

    kernel = functools.partial(_residual_block_kernel, t_rows=T, l_out=L_out,
                               cin_p=Cin_p, has_downsample=has_downsample)

    out = pl.pallas_call(
        kernel,
        out_shape=jax.ShapeDtypeStruct((N, L_out_p, Cout_p), out_dtype),
        grid_spec=pltpu.PrefetchScalarGridSpec(
            num_scalar_prefetch=0,
            grid=(N, nT),
            in_specs=in_specs,
            out_specs=pl.BlockSpec((1, T, Cout_p), lambda n, t: (n, t, 0)),
        ),
        compiler_params=pltpu.CompilerParams(
            dimension_semantics=("parallel", "parallel"),
            vmem_limit_bytes=vmem_limit),
    )(*in_arrays)

    out = out[:, :L_out, :Cout]                      # drop channel / L padding
    return jnp.transpose(out, (0, 2, 1))             # back to NCW


# --------------------- pure-JAX reference (PyTorch semantics, NCW) ---------------------

def _ref_conv1d(x_ncw, w_oik, stride, padding):
    return lax.conv_general_dilated(
        x_ncw, w_oik, window_strides=(stride,), padding=[(padding, padding)],
        dimension_numbers=("NCH", "OIH", "NCH"))


def _ref_bn(x_ncw, gamma, beta, mean, var, eps=1e-5):
    return ((x_ncw - mean[None, :, None]) / jnp.sqrt(var[None, :, None] + eps)
            * gamma[None, :, None] + beta[None, :, None])


def reference_block(x_ncw, params, stride):
    out = _ref_conv1d(x_ncw, params["w1"], stride, 1)
    out = _ref_bn(out, *params["bn1"])
    out = jnp.maximum(out, 0.0)
    out = _ref_conv1d(out, params["w2"], 1, 1)
    out = _ref_bn(out, *params["bn2"])
    identity = x_ncw
    if params.get("wd") is not None:
        identity = _ref_conv1d(x_ncw, params["wd"], stride, 0)
        identity = _ref_bn(identity, *params["bnd"])
    return jnp.maximum(out + identity, 0.0)


if __name__ == "__main__":
    def make_bn(k, c):
        k1, k2, k3, k4 = jax.random.split(k, 4)
        gamma = 1.0 + 0.1 * jax.random.normal(k1, (c,), jnp.float32)
        beta = 0.1 * jax.random.normal(k2, (c,), jnp.float32)
        mean = 0.1 * jax.random.normal(k3, (c,), jnp.float32)
        var = jax.random.uniform(k4, (c,), jnp.float32, 0.5, 1.5)
        return (gamma, beta, mean, var)

    def run_case(key, N, Cin, Cout, L, stride, tile_rows=512, mxu_dtype=None,
                 atol=1e-3, rtol=1e-3):
        ks = jax.random.split(key, 8)
        x = jax.random.normal(ks[0], (N, Cin, L), jnp.float32)
        params = {
            "w1": 0.3 * jax.random.normal(ks[1], (Cout, Cin, 3), jnp.float32),
            "w2": 0.3 * jax.random.normal(ks[2], (Cout, Cout, 3), jnp.float32),
            "bn1": make_bn(ks[4], Cout),
            "bn2": make_bn(ks[5], Cout),
            "wd": None,
        }
        if (stride != 1) or (Cin != Cout):
            params["wd"] = 0.3 * jax.random.normal(ks[3], (Cout, Cin, 1), jnp.float32)
            params["bnd"] = make_bn(ks[6], Cout)

        out = jax.block_until_ready(
            residual_block_1d(x, params, stride=stride,
                              mxu_dtype=mxu_dtype, tile_rows=tile_rows))
        ref = reference_block(x, params, stride)

        L_out = (L - 1) // stride + 1
        assert out.shape == (N, Cout, L_out), out.shape
        out_f32 = out.astype(jnp.float32)
        err = float(jnp.max(jnp.abs(out_f32 - ref)))
        assert jnp.allclose(out_f32, ref, atol=atol, rtol=rtol), err

    key = jax.random.PRNGKey(0)
    k1, k2, k3, k4 = jax.random.split(key, 4)
    run_case(k1, N=2, Cin=4, Cout=8, L=16, stride=2)                 # downsample branch
    run_case(k2, N=2, Cin=8, Cout=8, L=16, stride=1)                 # plain identity
    run_case(k3, N=1, Cin=8, Cout=16, L=40, stride=2, tile_rows=8)   # multi L-tile + halo mask
    run_case(k4, N=2, Cin=8, Cout=8, L=33, stride=1, tile_rows=8,    # bf16 MXU-operand path
             mxu_dtype=jnp.bfloat16, atol=0.1, rtol=0.1)
    print("KERNEL_OK")
</pallas_src>

<mosaic_0001>
module attributes {stable_mosaic.version = 11 : i64} {
  func.func @_residual_block_kernel(%arg0: i32, %arg1: i32, %arg2: memref<1x1x10x384xf32, #tpu.memory_space<vmem>>, %arg3: memref<384x128xf32, #tpu.memory_space<vmem>>, %arg4: memref<3x128x128xf32, #tpu.memory_space<vmem>>, %arg5: memref<128x128xf32, #tpu.memory_space<vmem>>, %arg6: memref<1x128xf32, #tpu.memory_space<vmem>>, %arg7: memref<1x128xf32, #tpu.memory_space<vmem>>, %arg8: memref<1x128xf32, #tpu.memory_space<vmem>>, %arg9: memref<1x8x128xf32, #tpu.memory_space<vmem>>) attributes {dimension_semantics = [#tpu.dimension_semantics<parallel>, #tpu.dimension_semantics<parallel>], iteration_bounds = array<i64: 2, 1>, scalar_prefetch = 0 : i64, scratch_operands = 0 : i64, tpu.core_type = #tpu.core_type<tc>, window_params = [{transform_indices = @transform_0, window_bounds = array<i64: 1, 1, 10, 384>}, {pipeline_mode = #tpu.pipeline_mode<synchronous>, transform_indices = @transform_1, window_bounds = array<i64: 384, 128>}, {pipeline_mode = #tpu.pipeline_mode<synchronous>, transform_indices = @transform_2, window_bounds = array<i64: 3, 128, 128>}, {pipeline_mode = #tpu.pipeline_mode<synchronous>, transform_indices = @transform_3, window_bounds = array<i64: 128, 128>}, {pipeline_mode = #tpu.pipeline_mode<synchronous>, transform_indices = @transform_4, window_bounds = array<i64: 1, 128>}, {pipeline_mode = #tpu.pipeline_mode<synchronous>, transform_indices = @transform_5, window_bounds = array<i64: 1, 128>}, {pipeline_mode = #tpu.pipeline_mode<synchronous>, transform_indices = @transform_6, window_bounds = array<i64: 1, 128>}, {transform_indices = @transform_7, window_bounds = array<i64: 1, 8, 128>}]} {
    %c0 = arith.constant 0 : index
    %c0_0 = arith.constant 0 : index
    %c0_1 = arith.constant 0 : index
    %c0_2 = arith.constant 0 : index
    %0 = vector.load %arg2[%c0, %c0_0, %c0_1, %c0_2] : memref<1x1x10x384xf32, #tpu.memory_space<vmem>>, vector<1x1x10x384xf32>
    %1 = vector.shape_cast %0 : vector<1x1x10x384xf32> to vector<10x384xf32>
    %c0_3 = arith.constant 0 : index
    %c0_4 = arith.constant 0 : index
    %2 = vector.load %arg3[%c0_3, %c0_4] : memref<384x128xf32, #tpu.memory_space<vmem>>, vector<384x128xf32>
    %cst = arith.constant dense<0.000000e+00> : vector<10x128xf32>
    %3 = tpu.matmul %1, %2, %cst {dimension_numbers = #tpu.dot_dimension_numbers<[1], [0], [0], [1], [0, 0, 1, 1], [], []>} : vector<10x384xf32>, vector<384x128xf32>, vector<10x128xf32> -> vector<10x128xf32>
    %c0_5 = arith.constant 0 : index
    %c0_6 = arith.constant 0 : index
    %4 = vector.load %arg6[%c0_5, %c0_6] : memref<1x128xf32, #tpu.memory_space<vmem>>, vector<1x128xf32>
    %5 = vector.broadcast %4 : vector<1x128xf32> to vector<10x128xf32>
    %6 = arith.addf %3, %5 : vector<10x128xf32>
    %cst_7 = arith.constant 0.000000e+00 : f32
    %7 = vector.broadcast %cst_7 : f32 to vector<10x128xf32>
    %8 = arith.maximumf %6, %7 : vector<10x128xf32>
    %c8_i32 = arith.constant 8 : i32
    %9 = arith.muli %arg1, %c8_i32 : i32
    %c1_i32 = arith.constant 1 : i32
    %10 = arith.subi %9, %c1_i32 : i32
    %11 = tpu.iota {dimensions = array<i32: 0>} : vector<10x1xi32>
    %12 = vector.broadcast %10 : i32 to vector<10x1xi32>
    %13 = arith.addi %12, %11 : vector<10x1xi32>
    %c0_i32 = arith.constant 0 : i32
    %14 = vector.broadcast %c0_i32 : i32 to vector<10x1xi32>
    %15 = arith.cmpi sge, %13, %14 : vector<10x1xi32>
    %c8_i32_8 = arith.constant 8 : i32
    %16 = vector.broadcast %c8_i32_8 : i32 to vector<10x1xi32>
    %17 = arith.cmpi slt, %13, %16 : vector<10x1xi32>
    %18 = arith.andi %15, %17 : vector<10x1xi1>
    %cst_9 = arith.constant 0.000000e+00 : f32
    %19 = vector.shape_cast %18 : vector<10x1xi1> to vector<10x1xi1>
    %20 = vector.broadcast %19 : vector<10x1xi1> to vector<10x128xi1>
    %21 = vector.broadcast %cst_9 : f32 to vector<10x128xf32>
    %22 = arith.select %20, %8, %21 : vector<10x128xi1>, vector<10x128xf32>
    %23 = vector.extract_strided_slice %22 {offsets = [0, 0], sizes = [8, 128], strides = [1, 1]} : vector<10x128xf32> to vector<8x128xf32>
    %c0_10 = arith.constant 0 : index
    %c0_11 = arith.constant 0 : index
    %c0_12 = arith.constant 0 : index
    %24 = vector.load %arg4[%c0_10, %c0_11, %c0_12] : memref<3x128x128xf32, #tpu.memory_space<vmem>>, vector<1x128x128xf32>
    %25 = vector.shape_cast %24 : vector<1x128x128xf32> to vector<128x128xf32>
    %cst_13 = arith.constant dense<0.000000e+00> : vector<8x128xf32>
    %26 = tpu.matmul %23, %25, %cst_13 {dimension_numbers = #tpu.dot_dimension_numbers<[1], [0], [0], [1], [0, 0, 1, 1], [], []>} : vector<8x128xf32>, vector<128x128xf32>, vector<8x128xf32> -> vector<8x128xf32>
    %27 = vector.extract_strided_slice %22 {offsets = [1, 0], sizes = [8, 128], strides = [1, 1]} : vector<10x128xf32> to vector<8x128xf32>
    %c1 = arith.constant 1 : index
    %c0_14 = arith.constant 0 : index
    %c0_15 = arith.constant 0 : index
    %28 = vector.load %arg4[%c1, %c0_14, %c0_15] : memref<3x128x128xf32, #tpu.memory_space<vmem>>, vector<1x128x128xf32>
    %29 = vector.shape_cast %28 : vector<1x128x128xf32> to vector<128x128xf32>
    %cst_16 = arith.constant dense<0.000000e+00> : vector<8x128xf32>
    %30 = tpu.matmul %27, %29, %cst_16 {dimension_numbers = #tpu.dot_dimension_numbers<[1], [0], [0], [1], [0, 0, 1, 1], [], []>} : vector<8x128xf32>, vector<128x128xf32>, vector<8x128xf32> -> vector<8x128xf32>
    %31 = arith.addf %26, %30 : vector<8x128xf32>
    %32 = vector.extract_strided_slice %22 {offsets = [2, 0], sizes = [8, 128], strides = [1, 1]} : vector<10x128xf32> to vector<8x128xf32>
    %c2 = arith.constant 2 : index
    %c0_17 = arith.constant 0 : index
    %c0_18 = arith.constant 0 : index
    %33 = vector.load %arg4[%c2, %c0_17, %c0_18] : memref<3x128x128xf32, #tpu.memory_space<vmem>>, vector<1x128x128xf32>
    %34 = vector.shape_cast %33 : vector<1x128x128xf32> to vector<128x128xf32>
    %cst_19 = arith.constant dense<0.000000e+00> : vector<8x128xf32>
    %35 = tpu.matmul %32, %34, %cst_19 {dimension_numbers = #tpu.dot_dimension_numbers<[1], [0], [0], [1], [0, 0, 1, 1], [], []>} : vector<8x128xf32>, vector<128x128xf32>, vector<8x128xf32> -> vector<8x128xf32>
    %36 = arith.addf %31, %35 : vector<8x128xf32>
    %c0_20 = arith.constant 0 : index
    %c0_21 = arith.constant 0 : index
    %37 = vector.load %arg7[%c0_20, %c0_21] : memref<1x128xf32, #tpu.memory_space<vmem>>, vector<1x128xf32>
    %38 = vector.broadcast %37 : vector<1x128xf32> to vector<8x128xf32>
    %39 = arith.addf %36, %38 : vector<8x128xf32>
    %40 = vector.extract_strided_slice %1 {offsets = [1, 128], sizes = [8, 128], strides = [1, 1]} : vector<10x384xf32> to vector<8x128xf32>
    %c0_22 = arith.constant 0 : index
    %c0_23 = arith.constant 0 : index
    %41 = vector.load %arg5[%c0_22, %c0_23] : memref<128x128xf32, #tpu.memory_space<vmem>>, vector<128x128xf32>
    %cst_24 = arith.constant dense<0.000000e+00> : vector<8x128xf32>
    %42 = tpu.matmul %40, %41, %cst_24 {dimension_numbers = #tpu.dot_dimension_numbers<[1], [0], [0], [1], [0, 0, 1, 1], [], []>} : vector<8x128xf32>, vector<128x128xf32>, vector<8x128xf32> -> vector<8x128xf32>
    %c0_25 = arith.constant 0 : index
    %c0_26 = arith.constant 0 : index
    %43 = vector.load %arg8[%c0_25, %c0_26] : memref<1x128xf32, #tpu.memory_space<vmem>>, vector<1x128xf32>
    %44 = vector.broadcast %43 : vector<1x128xf32> to vector<8x128xf32>
    %45 = arith.addf %42, %44 : vector<8x128xf32>
    %46 = arith.addf %39, %45 : vector<8x128xf32>
    %cst_27 = arith.constant 0.000000e+00 : f32
    %47 = vector.broadcast %cst_27 : f32 to vector<8x128xf32>
    %48 = arith.maximumf %46, %47 : vector<8x128xf32>
    %c0_28 = arith.constant 0 : index
    %c0_29 = arith.constant 0 : index
    %c0_30 = arith.constant 0 : index
    %49 = vector.load %arg9[%c0_28, %c0_29, %c0_30] : memref<1x8x128xf32, #tpu.memory_space<vmem>>, vector<1x8x128xf32>
    %50 = vector.shape_cast %49 : vector<1x8x128xf32> to vector<8x128xf32>
    %51 = vector.shape_cast %48 : vector<8x128xf32> to vector<1x8x128xf32>
    tpu.vector_store %arg9[%c0_28, %c0_29, %c0_30], %51 {strides = array<i32>} : memref<1x8x128xf32, #tpu.memory_space<vmem>>, vector<1x8x128xf32>,
    return
  }
  func.func @transform_0(%arg0: i32, %arg1: i32) -> (i32, i32, i32, i32) {
    %c0_i32 = arith.constant 0 : i32
    %c0_i32_0 = arith.constant 0 : i32
    %c0_i32_1 = arith.constant 0 : i32
    return %arg0, %arg1, %c0_i32, %c0_i32_0 : i32, i32, i32, i32
  }
  func.func @transform_1(%arg0: i32, %arg1: i32) -> (i32, i32) {
    %c0_i32 = arith.constant 0 : i32
    %c0_i32_0 = arith.constant 0 : i32
    %c0_i32_1 = arith.constant 0 : i32
    return %c0_i32, %c0_i32_0 : i32, i32
  }
  func.func @transform_2(%arg0: i32, %arg1: i32) -> (i32, i32, i32) {
    %c0_i32 = arith.constant 0 : i32
    %c0_i32_0 = arith.constant 0 : i32
    %c0_i32_1 = arith.constant 0 : i32
    %c0_i32_2 = arith.constant 0 : i32
    return %c0_i32, %c0_i32_0, %c0_i32_1 : i32, i32, i32
  }
  func.func @transform_3(%arg0: i32, %arg1: i32) -> (i32, i32) {
    %c0_i32 = arith.constant 0 : i32
    %c0_i32_0 = arith.constant 0 : i32
    %c0_i32_1 = arith.constant 0 : i32
    return %c0_i32, %c0_i32_0 : i32, i32
  }
  func.func @transform_4(%arg0: i32, %arg1: i32) -> (i32, i32) {
    %c0_i32 = arith.constant 0 : i32
    %c0_i32_0 = arith.constant 0 : i32
    %c0_i32_1 = arith.constant 0 : i32
    return %c0_i32, %c0_i32_0 : i32, i32
  }
  func.func @transform_5(%arg0: i32, %arg1: i32) -> (i32, i32) {
    %c0_i32 = arith.constant 0 : i32
    %c0_i32_0 = arith.constant 0 : i32
    %c0_i32_1 = arith.constant 0 : i32
    return %c0_i32, %c0_i32_0 : i32, i32
  }
  func.func @transform_6(%arg0: i32, %arg1: i32) -> (i32, i32) {
    %c0_i32 = arith.constant 0 : i32
    %c0_i32_0 = arith.constant 0 : i32
    %c0_i32_1 = arith.constant 0 : i32
    return %c0_i32, %c0_i32_0 : i32, i32
  }
  func.func @transform_7(%arg0: i32, %arg1: i32) -> (i32, i32, i32) {
    %c0_i32 = arith.constant 0 : i32
    %c0_i32_0 = arith.constant 0 : i32
    return %arg0, %arg1, %c0_i32 : i32, i32, i32
  }
}

</mosaic_0001>

<bundles_post_ra>
// kernel: tpu_custom_call.1
= control target key start
LH: loop header
LB: loop body
LE: loop exit
PB: predicated region body
PF: predicated region fallthrough
CT: control target
= control target key end

     0   :  { %12 = vsyncpa [#allocation3], 0  ;;  %s1955_s0 = inlined_call_operand.vmem [shape: f32[2,1,10,384], index: 0, kind: input, shape index: {}]   ;;  %s1956_s1 = inlined_call_operand.hbm [shape: f32[384,128], index: 1, kind: input, shape index: {}]   ;;  %s1957_s2 = inlined_call_operand.hbm [shape: f32[3,128,128], index: 2, kind: input, shape index: {}]   ;;  %s1958_s3 = inlined_call_operand.vmem [shape: f32[128,128], index: 3, kind: input, shape index: {}]   ;;  %s1959_s4 = inlined_call_operand.vmem [shape: f32[1,128], index: 4, kind: input, shape index: {}]   ;;  %s1960_s5 = inlined_call_operand.vmem [shape: f32[1,128], index: 5, kind: input, shape index: {}]   ;;  %s1961_s6 = inlined_call_operand.vmem [shape: f32[1,128], index: 6, kind: input, shape index: {}]   ;;  %s1962_s7 = inlined_call_operand.hbm [shape: f32[2,8,128], index: 7, kind: output, shape index: {}]  }
   0x1   :  { %13 = vsyncpa [#allocation6], 0 }
   0x2   :  { %14 = vsyncpa [#allocation4], 0 }
   0x3   :  { %16 = vsyncpa [#allocation4 + $0x1], 0  ;;  %s1649_s24 = smov 0   ;;  %s1651_s25 = smov 0  }
   0x4   :  { %s1653_s26 = smov 0   ;;  %s1655_s27 = smov 0  }
   0x5   :  { %s1657_s28 = smov 0   ;;  %s1659_s29 = smov 0  }
   0x6 LB: > { %s1065_s30 = sadd.s32 4294967295, %s1600_s29   ;;  %s1066_s8 = sadd.s32 4294967294, %s1600_s29   ;;  %s1600_s29 = sphi %s1659_s29, %s22_s29   ;;  %s1596_s28 = sphi %s1657_s28, %s1975_s28   ;;  %s1592_s27 = sphi %s1655_s27, %s1974_s27   ;;  %s1588_s26 = sphi %s1653_s26, %s1973_s26   ;;  %s1584_s25 = sphi %s1651_s25, %s1972_s25   ;;  %s1580_s24 = sphi %s1649_s24, %s1971_s24  }
   0x7   : > { %s34_s9 = sadd.s32 1, %s1596_s28  ;;  %s197_s10 = sadd.s32 1, %s1588_s26 }
   0x8   : > { %p36_p0 = scmp.ge.s32.totalorder %s34_s9, 2  ;;  %p207_p1 = scmp.ne.s32.totalorder %s1588_s26, %s1584_s25 }
   0x9   : > { %p208_p2 = scmp.eq.s32.totalorder %s1065_s30, 1  ;;  %p213_p3 = scmp.ne.s32.totalorder %s1584_s25, %s1580_s24 }
   0xa   : > { %s1977_s9 = smov (%p36_p0, %s34_s9), 0  ;;  %p214_p5 = scmp.eq.s32.totalorder %s1066_s8, 1 }
   0xb   : > { %p1689_p4 = por %p208_p2, %p207_p1  ;;  %s192_s12 = ssub.s32 %s1596_s28, %s1977_s9 }
   0xc   : > { %p1067_p6 = scmp.ge.s32.totalorder %s1600_s29, 1  ;;  %p195_p7 = scmp.eq.s32.totalorder %s192_s12, 0 }
   0xd   : > { %s1964_s11 = scalar_select %p1689_p4, 1, 0 }
   0xe   : > { %p1696_p8 = por %p214_p5, %p213_p3  ;;  %p221_p9 = scmp.lt.s32.totalorder %s1600_s29, 3 }
   0xf   : > { %s1702_s14 = scalar_select %p195_p7, %s1588_s26, %s197_s10  }
  0x10   : > { %s1965_s13 = scalar_select %p1696_p8, 1, 0 }
  0x11   : > { %p1704_p10 = pnand %p1067_p6, %p221_p9  ;;  %p1708_p11 = scmp.eq.s32.totalorder %s1065_s30, 0 }
  0x12   : > { %s1602_s17 = smov [#allocation2]   ;;  %s1603_s20 = smov [#allocation5]  }
  0x13   : > { %p1394_p12 = pneg %p1704_p10  ;;  %s233_s18 = sshll.u32 %s1602_s17, 4  ;;  %s234_s18 = int_to_ptr.vmem [resolvable:$true] %s233_s18 }
  0x14   : > { %s246_s21 = sshll.u32 %s1603_s20, 4  ;;  %s1475_s22 = scalar_lea.vmem %s234_s18, 6144  ;;  %s247_s21 = int_to_ptr.vmem [resolvable:$true] %s246_s21 }
  0x15   : > { %p1716_p13 = pnand %p1708_p11, %p1394_p12  ;;  %p1476_p1 = scmp.ne.s32.totalorder %s234_s18, %s1475_s22 }
  0x16   : > { %p1483_p5 = scmp.lt.s32.totalorder %s234_s18, %s234_s18  ;;  %p1484_p6 = scmp.lt.s32.totalorder %s1475_s22, %s1475_s22 }
  0x17   : > { %p1466_p0 = pneg %p1716_p13 }
  0x18   : > { %p1485_p7 = por %p1484_p6, %p1483_p5 }
  0x19   : > { %p1478_p2 = pnand %p1476_p1, %p1466_p0 }
  0x1b   : > { %p1479_p3 = pneg %p1478_p2 }
  0x1d   : > { %p1486_p9 = pnand %p1485_p7, %p1479_p3 }
  0x1f   : > { %1489 = shalt.err (!%p1486_p9)
}
  0x20   : > { %s1604_s23 = smov 128   ;;  %s1605_s30 = smov 8  }
  0x21   : > { %1397 = dma.hbm_to_vmem [thread:$0]  (!%p1716_p13), %s1956_s1, 6144, %s234_s18, [#allocation3], %s1604_s23, %s1604_s23, %s1605_s30  }
  0x22   : > { %s1501_s12 = scalar_lea.vmem %s247_s21, 6144  ;;  %p1509_p8 = scmp.lt.s32.totalorder %s247_s21, %s247_s21 }
  0x23   : > { %p1502_p12 = scmp.ne.s32.totalorder %s247_s21, %s1501_s12  ;;  %p1510_p4 = scmp.lt.s32.totalorder %s1501_s12, %s1501_s12 }
  0x25   : > { %p1504_p1 = pnand %p1502_p12, %p1466_p0  ;;  %p1511_p5 = por %p1510_p4, %p1509_p8 }
  0x27   : > { %p1505_p2 = pneg %p1504_p1 }
  0x29   : > { %p1512_p3 = pnand %p1511_p5, %p1505_p2 }
  0x2b   : > { %1515 = shalt.err (!%p1512_p3)
}
  0x2c   : > { %1400 = dma.hbm_to_vmem [thread:$0]  (!%p1716_p13), %s1957_s2, 6144, %s247_s21, [#allocation6], %s1604_s23, %s1604_s23, %s1605_s30  }
  0x2d   : > { %286 = sbr.rel (%p1704_p10) target bundleno = 543 (0x21f), region = 48 }
  0x32   : > { %1567 = dma.done.wait (%p1708_p11), [#allocation3], 6144  }
  0x33   : > { %1569 = vsyncadd (%p1708_p11), [#allocation3], 4294961152 }
  0x34   : > { %1571 = dma.done.wait (%p1708_p11), [#allocation6], 6144  }
  0x35   : > { %1573 = vsyncadd (%p1708_p11), [#allocation6], 4294961152  ;;  %v372_v0 = vld [vmem:[#allocation2 + $0xf8] sm:$0xff]  ;;  %v371_v2 = vld [vmem:[#allocation2 + $0xf0] sm:$0xff]  ;;  %p326_p4 = scmp.lt.s32.totalorder %s1592_s27, 1  ;;  %v1606_v55 = vmov 0.0  }
  0x36   : > { %v356_v1 = vld [vmem:[#allocation2 + $0x78] sm:$0xff]  ;;  %1084 = vmatprep.subr.mxu0 %v372_v0  ;;  %v355_v3 = vld [vmem:[#allocation2 + $0x70] sm:$0xff]  ;;  %v370_v5 = vld [vmem:[#allocation2 + $0xe8] sm:$0xff]  ;;  %vm1607_vm0 = vmmov 0   ;;  %vm603_vm1 = vcmask 1046528   ;;  %vm765_vm4 = vcmask 1045504  }
  0x37   : > { %v388_v4 = vld [vmem:[#allocation2 + $0x178] sm:$0xff]  ;;  %1085 = vmatpush3.msra.mxu0 %v356_v1  ;;  %v387_v6 = vld [vmem:[#allocation2 + $0x170] sm:$0xff]  ;;  %v354_v7 = vld [vmem:[#allocation2 + $0x68] sm:$0xff]  ;;  %s1752_s15 = scalar_select %p326_p4, %s1592_s27, 1 }
  0x38   : > { %1208 = vmatprep.subr.mxu1 %v388_v4  ;;  %1086 = vmatprep.subr.mxu0 %v371_v2  ;;  %v386_v8 = vld [vmem:[#allocation2 + $0x168] sm:$0xff]  ;;  %v369_v9 = vld [vmem:[#allocation2 + $0xe0] sm:$0xff]  ;;  %v368_v12 = vld [vmem:[#allocation2 + $0xd8] sm:$0xff]  ;;  %s1081_s23 = sshll.u32 %s1592_s27, 7  ;;  %p1969_p10 = scmp.ne.s32.totalorder %s1964_s11, 0 }
  0x39   : > { %1209 = vmatpush3.msra.mxu1 %v388_v4  ;;  %1087 = vmatpush3.msra.mxu0 %v355_v3  ;;  %v353_v10 = vld [vmem:[#allocation2 + $0x60] sm:$0xff]  ;;  %v352_v13 = vld [vmem:[#allocation2 + $0x58] sm:$0xff]  ;;  %v367_v15 = vld [vmem:[#allocation2 + $0xd0] sm:$0xff]  ;;  %s1383_s16 = smul.u32 48, %s1752_s15  ;;  %s323_s15 = sand.u32 1, %s1584_s25  }
  0x3a   : > { %1210 = vmatprep.subr.mxu1 %v387_v6  ;;  %1088 = vmatprep.subr.mxu0 %v370_v5  ;;  %v385_v11 = vld [vmem:[#allocation2 + $0x160] sm:$0xff]  ;;  %v384_v14 = vld [vmem:[#allocation2 + $0x158] sm:$0xff]  ;;  %v351_v16 = vld [vmem:[#allocation2 + $0x50] sm:$0xff]  ;;  %s1074_s19 = sshll.u32 %s323_s15, 3  ;;  %s964_s17 = scalar_lea.hbm %s1962_s7, %s1081_s23 }
  0x3b   : > { %1211 = vmatpush3.msra.mxu1 %v387_v6  ;;  %1089 = vmatpush3.msra.mxu0 %v354_v7  ;;  %v383_v17 = vld [vmem:[#allocation2 + $0x150] sm:$0xff]  ;;  %v366_v18 = vld [vmem:[#allocation2 + $0xc8] sm:$0xff]  ;;  %v365_v21 = vld [vmem:[#allocation2 + $0xc0] sm:$0xff]  ;;  %s1758_s21 = scalar_lea.vmem %s1955_s0, %s1383_s16  ;;  %s325_s30 = scalar_lea.vmem [#allocation7], %s1074_s19 }
  0x3c   : > { %1212 = vmatprep.subr.mxu1 %v386_v8  ;;  %1090 = vmatprep.subr.mxu0 %v369_v9  ;;  %v350_v19 = vld [vmem:[#allocation2 + $0x48] sm:$0xff]  ;;  %v349_v22 = vld [vmem:[#allocation2 + $0x40] sm:$0xff]  ;;  %v364_v24 = vld [vmem:[#allocation2 + $0xb8] sm:$0xff]  ;;  %s966_s8 = sshll.u32 %s325_s30, 4  ;;  %s952_s20 = scalar_lea.sflag [#allocation4], %s323_s15  ;;  %s967_s8 = int_to_ptr.vmem [resolvable:$true] %s966_s8 }
  0x3d   : > { %1213 = vmatpush3.msra.mxu1 %v386_v8  ;;  %1091 = vmatpush3.msra.mxu0 %v353_v10  ;;  %v382_v20 = vld [vmem:[#allocation2 + $0x148] sm:$0xff]  ;;  %v381_v23 = vld [vmem:[#allocation2 + $0x140] sm:$0xff]  ;;  %v348_v25 = vld [vmem:[#allocation2 + $0x38] sm:$0xff]  ;;  %s1516_s16 = scalar_lea.vmem %s967_s8, 128  ;;  %s1608_s18 = smov [#allocation7]  }
  0x3e   : > { %1214 = vmatprep.subr.mxu1 %v385_v11  ;;  %1092 = vmatprep.subr.mxu0 %v368_v12  ;;  %v380_v26 = vld [vmem:[#allocation2 + $0x138] sm:$0xff]  ;;  %v363_v27 = vld [vmem:[#allocation2 + $0xb0] sm:$0xff]  ;;  %v362_v30 = vld [vmem:[#allocation2 + $0xa8] sm:$0xff]  ;;  %p1517_p8 = scmp.ne.s32.totalorder %s967_s8, %s1516_s16 }
  0x3f   : > { %1215 = vmatpush3.msra.mxu1 %v385_v11  ;;  %1093 = vmatpush3.msra.mxu0 %v352_v13  ;;  %v347_v28 = vld [vmem:[#allocation2 + $0x30] sm:$0xff]  ;;  %v346_v31 = vld [vmem:[#allocation2 + $0x28] sm:$0xff]  ;;  %v361_v33 = vld [vmem:[#allocation2 + $0xa0] sm:$0xff] }
  0x40   : > { %1216 = vmatprep.subr.mxu1 %v384_v14  ;;  %1094 = vmatprep.subr.mxu0 %v367_v15  ;;  %v379_v29 = vld [vmem:[#allocation2 + $0x130] sm:$0xff]  ;;  %v378_v32 = vld [vmem:[#allocation2 + $0x128] sm:$0xff]  ;;  %v345_v34 = vld [vmem:[#allocation2 + $0x20] sm:$0xff]  ;;  %p1518_p11 = pnand %p1517_p8, %p1969_p10 }
  0x41   : > { %1217 = vmatpush3.msra.mxu1 %v384_v14  ;;  %1095 = vmatpush3.msra.mxu0 %v351_v16  ;;  %v377_v35 = vld [vmem:[#allocation2 + $0x120] sm:$0xff]  ;;  %v360_v36 = vld [vmem:[#allocation2 + $0x98] sm:$0xff]  ;;  %v359_v39 = vld [vmem:[#allocation2 + $0x90] sm:$0xff] }
  0x42   : > { %1218 = vmatprep.subr.mxu1 %v383_v17  ;;  %1096 = vmatprep.subr.mxu0 %v366_v18  ;;  %v344_v37 = vld [vmem:[#allocation2 + $0x18] sm:$0xff]  ;;  %v343_v40 = vld [vmem:[#allocation2 + $0x10] sm:$0xff]  ;;  %v358_v42 = vld [vmem:[#allocation2 + $0x88] sm:$0xff]  ;;  %p1519_p13 = pneg %p1518_p11 }
  0x43   : > { %1219 = vmatpush3.msra.mxu1 %v383_v17  ;;  %1097 = vmatpush3.msra.mxu0 %v350_v19  ;;  %v376_v38 = vld [vmem:[#allocation2 + $0x118] sm:$0xff]  ;;  %v375_v41 = vld [vmem:[#allocation2 + $0x110] sm:$0xff]  ;;  %v1761_v43 = vld [vmem:[%s1758_s21 + $0x8] sm:$0xff] }
  0x44   : > { %1220 = vmatprep.subr.mxu1 %v382_v20  ;;  %1098 = vmatprep.subr.mxu0 %v365_v21  ;;  %v342_v44 = vld [vmem:[#allocation2 + $0x8] sm:$0xff]  ;;  %v357_v45 = vld [vmem:[#allocation2 + $0x80] sm:$0xff]  ;;  %v337_v51 = vld [vmem:[%s1758_s21 + $0x10] sm:$0xff] }
  0x45   : > { %1221 = vmatpush3.msra.mxu1 %v382_v20  ;;  %1099 = vmatpush3.msra.mxu0 %v349_v22  ;;  %v374_v46 = vld [vmem:[#allocation2 + $0x108] sm:$0xff]  ;;  %v341_v47 = vld [vmem:[#allocation2] sm:$0xff]  ;;  %v338_v53 = vld [vmem:[%s1758_s21 + $0x18] sm:$0x3] }
  0x46   : > { %1222 = vmatprep.subr.mxu1 %v381_v23  ;;  %1100 = vmatprep.subr.mxu0 %v364_v24  ;;  %v335_v48 = vld [vmem:[%s1758_s21] sm:$0xff]  ;;  %v340_v52 = vld [vmem:[%s1758_s21 + $0x28] sm:$0x3]  ;;  %v583_v54 = vld [vmem:[#allocation5 + $0x78] sm:$0xff] }
  0x47   : > { %1223 = vmatpush3.msra.mxu1 %v381_v23  ;;  %1101 = vmatpush3.msra.mxu0 %v348_v25  ;;  %v373_v49 = vld [vmem:[#allocation2 + $0x100] sm:$0xff]  ;;  %v600_v56 = vld [vmem:[#allocation5 + $0xf8] sm:$0xff]  ;;  %v582_v57 = vld [vmem:[#allocation5 + $0x70] sm:$0xff]  ;;  %v874_v23 = vrot.slane %v1761_v43, 1 }
  0x48   : > { %1224 = vmatprep.subr.mxu1 %v380_v26  ;;  %1102 = vmatprep.subr.mxu0 %v363_v27  ;;  %v1766_v50 = vld [vmem:[%s1758_s21 + $0x20] sm:$0x3]  ;;  %v599_v58 = vld [vmem:[#allocation5 + $0xf0] sm:$0xff]  ;;  %v581_v59 = vld [vmem:[#allocation5 + $0x68] sm:$0xff]  ;;  %s1520_s21 = sshll.u32 %s1608_s18, 4  ;;  %s1521_s21 = int_to_ptr.vmem [resolvable:$false] %s1520_s21 }
  0x49   : > { %1225 = vmatpush3.msra.mxu1 %v380_v26  ;;  %1103 = vmatpush3.msra.mxu0 %v347_v28  ;;  %v598_v60 = vld [vmem:[#allocation5 + $0xe8] sm:$0xff]  ;;  %v580_v61 = vld [vmem:[#allocation5 + $0x60] sm:$0xff]  ;;  %v579_v63 = vld [vmem:[#allocation5 + $0x58] sm:$0xff]  ;;  %v875_v24 = vrot.slane %v1766_v50, 1  ;;  %v550_v26 = vlaneseq  ;;  %s1522_s27 = scalar_lea.vmem %s1521_s21, 256  ;;  %p1523_p0 = scmp.lt.s32.totalorder %s967_s8, %s1521_s21 }
  0x4a   : > { %1226 = vmatprep.subr.mxu1 %v379_v29  ;;  %1104 = vmatprep.subr.mxu0 %v362_v30  ;;  %v597_v62 = vld [vmem:[#allocation5 + $0xe0] sm:$0xff]  ;;  %v596_v0 = vld [vmem:[#allocation5 + $0xd8] sm:$0xff]  ;;  %v578_v1 = vld [vmem:[#allocation5 + $0x50] sm:$0xff]  ;;  %p1524_p6 = scmp.lt.s32.totalorder %s1522_s27, %s1516_s16 }
  0x4b   : > { %1227 = vmatpush3.msra.mxu1 %v379_v29  ;;  %1105 = vmatpush3.msra.mxu0 %v346_v31  ;;  %v595_v2 = vld [vmem:[#allocation5 + $0xd0] sm:$0xff]  ;;  %v577_v3 = vld [vmem:[#allocation5 + $0x48] sm:$0xff]  ;;  %v576_v5 = vld [vmem:[#allocation5 + $0x40] sm:$0xff]  ;;  %v1813_v25 = vsel %vm603_vm1, %v874_v23, %v875_v24  ;;  %v551_v28 = vshrl.u32 %v550_v26, 7 }
  0x4c   : > { %1228 = vmatprep.subr.mxu1 %v378_v32  ;;  %1106 = vmatprep.subr.mxu0 %v361_v33  ;;  %v594_v4 = vld [vmem:[#allocation5 + $0xc8] sm:$0xff]  ;;  %v575_v6 = vld [vmem:[#allocation5 + $0x38] sm:$0xff]  ;;  %v574_v7 = vld [vmem:[#allocation5 + $0x30] sm:$0xff]  ;;  %p1525_p7 = por %p1524_p6, %p1523_p0 }
  0x4d   : > { %1229 = vmatpush3.msra.mxu1 %v378_v32  ;;  %1107 = vmatpush3.msra.mxu0 %v345_v34  ;;  %v573_v8 = vld [vmem:[#allocation5 + $0x28] sm:$0xff]  ;;  %v593_v9 = vld [vmem:[#allocation5 + $0xc0] sm:$0xff]  ;;  %v592_v11 = vld [vmem:[#allocation5 + $0xb8] sm:$0xff]  ;;  %v552_v34 = vadd.s32 8, %v551_v28 }
  0x4e   : > { %1230 = vmatprep.subr.mxu1 %v377_v35  ;;  %1108 = vmatprep.subr.mxu0 %v360_v36  ;;  %v572_v10 = vld [vmem:[#allocation5 + $0x20] sm:$0xff]  ;;  %v571_v12 = vld [vmem:[#allocation5 + $0x18] sm:$0xff]  ;;  %v591_v13 = vld [vmem:[#allocation5 + $0xb0] sm:$0xff]  ;;  %p1526_p9 = pnand %p1525_p7, %p1519_p13 }
  0x4f   : > { %1231 = vmatpush3.msra.mxu1 %v377_v35  ;;  %1109 = vmatpush3.msra.mxu0 %v344_v37  ;;  %v570_v14 = vld [vmem:[#allocation5 + $0x10] sm:$0xff]  ;;  %v590_v15 = vld [vmem:[#allocation5 + $0xa8] sm:$0xff]  ;;  %v589_v17 = vld [vmem:[#allocation5 + $0xa0] sm:$0xff]  ;;  %v554_v35 = vadd.s32 4294967295, %v551_v28 }
  0x50   : > { %1232 = vmatprep.subr.mxu1 %v376_v38  ;;  %1110 = vmatprep.subr.mxu0 %v359_v39  ;;  %v569_v16 = vld [vmem:[#allocation5 + $0x8] sm:$0xff]  ;;  %v568_v18 = vld [vmem:[#allocation5] sm:$0xff]  ;;  %v588_v19 = vld [vmem:[#allocation5 + $0x98] sm:$0xff] }
  0x51   : > { %1233 = vmatpush3.msra.mxu1 %v376_v38  ;;  %1111 = vmatpush3.msra.mxu0 %v343_v40  ;;  %v587_v20 = vld [vmem:[#allocation5 + $0x90] sm:$0xff]  ;;  %v586_v21 = vld [vmem:[#allocation5 + $0x88] sm:$0xff]  ;;  %v585_v22 = vld [vmem:[#allocation5 + $0x80] sm:$0xff]  ;;  %vm556_vm2 = vcmp.ge.s32.totalorder %v554_v35, 0 }
  0x52   : > { %1234 = vmatprep.subr.mxu1 %v375_v41  ;;  %1112 = vmatprep.subr.mxu0 %v358_v42  ;;  %v1076_v30 = vld [vmem:[%s1959_s4] ss:$0 sm:$0xff] }
  0x53   : > { %460 = vmatprep.mubr.f32.mxu0 %v1761_v43  ;;  %1113 = vmatpush3.msra.mxu0 %v342_v44  ;;  %v864_v44 = vld [vmem:[%s1958_s3 + $0x78] sm:$0xff] }
  0x54   : > { %1235 = vmatpush3.msra.mxu1 %v375_v41  ;;  %1114 = vmatprep.subr.mxu0 %v357_v45  ;;  %v555_v41 = vadd.s32 4294967295, %v552_v34 }
  0x55   : > { %1236 = vmatprep.subr.mxu1 %v374_v46  ;;  %1115 = vmatpush3.msra.mxu0 %v341_v47 }
  0x56   : > { %1237 = vmatpush3.msra.mxu1 %v374_v46  ;;  %461 = vmatmul.mubr.f32.vlgmr.msra.gmra.mxu0 %v335_v48  ;;  %v863_v46 = vld [vmem:[%s1958_s3 + $0x70] sm:$0xff]  ;;  %vm559_vm3 = vcmp.lt.s32.totalorder %v555_v41, 8 }
  0x57   : > { %1238 = vmatprep.subr.mxu1 %v373_v49  ;;  %465 = vmatprep.mubr.f32.mxu0 %v1766_v50 }
  0x58   : > { %1239 = vmatpush3.msra.mxu1 %v373_v49  ;;  %1240 = vmatprep.mubr.f32.mxu1 %v337_v51  ;;  %v862_v49 = vld [vmem:[%s1958_s3 + $0x68] sm:$0xff]  ;;  %v861_v51 = vld [vmem:[%s1958_s3 + $0x60] sm:$0xff] }
  0x59   : > { %1278 = vmatprep.subr.mxu1 %v1606_v55  ;;  %1241 = vmatmul.mubr.f32.vlgmr.msra.gmra.mxu1 %v340_v52 }
  0x5a   : > { %1243 = vmatprep.subr.mxu0 %v1606_v55  ;;  %466 = vmatmul.mubr.f32.gmra.mxu0 %v338_v53 }
  0x5b   : > { %1279 = vmatpush3.msra.mxu1 %v583_v54  ;;  %1244 = vmatpush3.msra.mxu0 %v600_v56  ;;  %v764_v54 = vld [vmem:[#allocation5 + $0x178] sm:$0xff] }
  0x5c   : > { %1280 = vmatprep.subr.mxu1 %v1606_v55  ;;  %1245 = vmatprep.subr.mxu0 %v1606_v55  ;;  %v860_v56 = vld [vmem:[%s1958_s3 + $0x58] sm:$0xff] }
  0x5d   : > { %1281 = vmatpush3.msra.mxu1 %v582_v57  ;;  %1246 = vmatpush3.msra.mxu0 %v599_v58  ;;  %v763_v58 = vld [vmem:[#allocation5 + $0x170] sm:$0xff] }
  0x5e   : > { %1282 = vmatprep.subr.mxu1 %v1606_v55  ;;  %1247 = vmatprep.subr.mxu0 %v1606_v55 }
  0x5f   : > { %1283 = vmatpush3.msra.mxu1 %v581_v59  ;;  %1248 = vmatpush3.msra.mxu0 %v598_v60  ;;  %v859_v59 = vld [vmem:[%s1958_s3 + $0x50] sm:$0xff]  ;;  %v762_v60 = vld [vmem:[#allocation5 + $0x168] sm:$0xff] }
  0x60   : > { %1284 = vmatprep.subr.mxu1 %v1606_v55  ;;  %1249 = vmatprep.subr.mxu0 %v1606_v55 }
  0x61   : > { %1285 = vmatpush3.msra.mxu1 %v580_v61  ;;  %1250 = vmatpush3.msra.mxu0 %v597_v62  ;;  %v858_v61 = vld [vmem:[%s1958_s3 + $0x48] sm:$0xff]  ;;  %v761_v62 = vld [vmem:[#allocation5 + $0x160] sm:$0xff] }
  0x62   : > { %1286 = vmatprep.subr.mxu1 %v1606_v55  ;;  %1251 = vmatprep.subr.mxu0 %v1606_v55 }
  0x63   : > { %1287 = vmatpush3.msra.mxu1 %v579_v63  ;;  %1252 = vmatpush3.msra.mxu0 %v596_v0  ;;  %v857_v63 = vld [vmem:[%s1958_s3 + $0x40] sm:$0xff]  ;;  %v760_v0 = vld [vmem:[#allocation5 + $0x158] sm:$0xff] }
  0x64   : > { %1288 = vmatprep.subr.mxu1 %v1606_v55  ;;  %1253 = vmatprep.subr.mxu0 %v1606_v55 }
  0x65   : > { %1289 = vmatpush3.msra.mxu1 %v578_v1  ;;  %1254 = vmatpush3.msra.mxu0 %v595_v2  ;;  %v856_v1 = vld [vmem:[%s1958_s3 + $0x38] sm:$0xff]  ;;  %v759_v2 = vld [vmem:[#allocation5 + $0x150] sm:$0xff] }
  0x66   : > { %1290 = vmatprep.subr.mxu1 %v1606_v55  ;;  %1255 = vmatprep.subr.mxu0 %v1606_v55 }
  0x67   : > { %1291 = vmatpush3.msra.mxu1 %v577_v3  ;;  %1256 = vmatpush3.msra.mxu0 %v594_v4  ;;  %v855_v3 = vld [vmem:[%s1958_s3 + $0x30] sm:$0xff]  ;;  %v758_v4 = vld [vmem:[#allocation5 + $0x148] sm:$0xff] }
  0x68   : > { %1292 = vmatprep.subr.mxu1 %v1606_v55  ;;  %1257 = vmatprep.subr.mxu0 %v1606_v55 }
  0x69   : > { %1293 = vmatpush3.msra.mxu1 %v576_v5  ;;  %1258 = vmatpush3.msra.mxu0 %v593_v9  ;;  %v854_v5 = vld [vmem:[%s1958_s3 + $0x28] sm:$0xff]  ;;  %v852_v9 = vld [vmem:[%s1958_s3 + $0x18] sm:$0xff] }
  0x6a   : > { %1294 = vmatprep.subr.mxu1 %v1606_v55  ;;  %1259 = vmatprep.subr.mxu0 %v1606_v55 }
  0x6b   : > { %1295 = vmatpush3.msra.mxu1 %v575_v6  ;;  %1260 = vmatpush3.msra.mxu0 %v592_v11  ;;  %v757_v6 = vld [vmem:[#allocation5 + $0x140] sm:$0xff]  ;;  %v851_v11 = vld [vmem:[%s1958_s3 + $0x10] sm:$0xff] }
  0x6c   : > { %1296 = vmatprep.subr.mxu1 %v1606_v55  ;;  %1261 = vmatprep.subr.mxu0 %v1606_v55 }
  0x6d   : > { %1297 = vmatpush3.msra.mxu1 %v574_v7  ;;  %1262 = vmatpush3.msra.mxu0 %v591_v13  ;;  %v853_v7 = vld [vmem:[%s1958_s3 + $0x20] sm:$0xff]  ;;  %v850_v13 = vld [vmem:[%s1958_s3 + $0x8] sm:$0xff] }
  0x6e   : > { %1298 = vmatprep.subr.mxu1 %v1606_v55  ;;  %1263 = vmatprep.subr.mxu0 %v1606_v55 }
  0x6f   : > { %1299 = vmatpush3.msra.mxu1 %v573_v8  ;;  %1264 = vmatpush3.msra.mxu0 %v590_v15  ;;  %v756_v8 = vld [vmem:[#allocation5 + $0x138] sm:$0xff]  ;;  %v849_v15 = vld [vmem:[%s1958_s3] sm:$0xff] }
  0x70   : > { %1300 = vmatprep.subr.mxu1 %v1606_v55  ;;  %1265 = vmatprep.subr.mxu0 %v1606_v55 }
  0x71   : > { %1301 = vmatpush3.msra.mxu1 %v572_v10  ;;  %1266 = vmatpush3.msra.mxu0 %v589_v17  ;;  %v755_v10 = vld [vmem:[#allocation5 + $0x130] sm:$0xff] }
  0x72   : > { %1302 = vmatprep.subr.mxu1 %v1606_v55  ;;  %1267 = vmatprep.subr.mxu0 %v1606_v55  ;;  %v751_v17 = vld [vmem:[#allocation5 + $0x110] sm:$0xff] }
  0x73   : > { %1303 = vmatpush3.msra.mxu1 %v571_v12  ;;  %1310 = vmatprep.mubr.msk.f32.mxu1 %vm1607_vm0, %v1606_v55  ;;  %v754_v12 = vld [vmem:[#allocation5 + $0x128] sm:$0xff] }
  0x74   : > { %1304 = vmatprep.subr.mxu1 %v1606_v55  ;;  %1268 = vmatpush3.msra.mxu0 %v588_v19 }
  0x75   : > { %1305 = vmatpush3.msra.mxu1 %v570_v14  ;;  %1269 = vmatprep.subr.mxu0 %v1606_v55  ;;  %v753_v14 = vld [vmem:[#allocation5 + $0x120] sm:$0xff] }
  0x76   : > { %1306 = vmatprep.subr.mxu1 %v1606_v55  ;;  %1275 = vmatprep.mubr.msk.f32.mxu0 %vm1607_vm0, %v1606_v55 }
  0x77   : > { %1307 = vmatpush3.msra.mxu1 %v569_v16  ;;  %1270 = vmatpush3.msra.mxu0 %v587_v20  ;;  %v752_v16 = vld [vmem:[#allocation5 + $0x118] sm:$0xff]  ;;  %v749_v20 = vld [vmem:[#allocation5 + $0x100] sm:$0xff] }
  0x78   : > { %1308 = vmatprep.subr.mxu1 %v1606_v55  ;;  %1271 = vmatprep.subr.mxu0 %v1606_v55 }
  0x79   : > { %1309 = vmatpush3.msra.mxu1 %v568_v18  ;;  %1272 = vmatpush3.msra.mxu0 %v586_v21  ;;  %v750_v18 = vld [vmem:[#allocation5 + $0x108] sm:$0xff] }
  0x7a   : > { %1348 = vmatprep.subr.mxu1 %v1606_v55  ;;  %1273 = vmatprep.subr.mxu0 %v1606_v55 }
  0x7b   : > { %1274 = vmatpush3.msra.mxu0 %v585_v22 }
  0x7c   : > { %1313 = vmatprep.subr.mxu0 %v1606_v55 }
 0x116   : > { %v1116_v27 = vpop.f32.mrf.mxu0 }
 0x118   : > { %v1117_v29 = vpop.f32.mrf.mxu0 }
 0x119   : > { %v1118_v31 = vadd.f32 %v1117_v29, %v1116_v27  ;;  %v1242_v32 = vpop.f32.mrf.mxu1  ;;  %v1079_v29 = vld [vmem:[%s1961_s6] ss:$0 sm:$0xff] }
 0x11a   : > { %v1119_v33 = vpop.f32.mrf.mxu0 }
 0x11b   : > { %v463_v36 = vadd.f32 %v1118_v31, %v1076_v30  ;;  %v537_v37 = vpop.f32.mrf.mxu1 }
 0x11c   : > { %v1120_v38 = vpop.f32.mrf.mxu0 }
 0x11d   : > { %v1121_v39 = vadd.f32 %v1120_v38, %v1119_v33  ;;  %v538_v40 = vadd.f32 %v537_v37, %v463_v36 }
 0x11f   : > { %v468_v42 = vadd.f32 %v1121_v39, %v1076_v30  ;;  %v546_v43 = vmax.f32 %v538_v40, 0.0 }
 0x121   : > { %v543_v45 = vadd.f32 %v1242_v32, %v468_v42  ;;  %1311 = vmatmul.mubr.msk.f32.vlgmr.msra.gmra.mxu1 %vm556_vm2, %v546_v43  ;;  %v1826_v48 = vsel %vm556_vm2, %v546_v43, 0.0 }
 0x122   : > { %1349 = vmatpush3.msra.mxu1 %v864_v44  ;;  %1380 = vmatprep.mubr.msk.f32.mxu1 %vm1607_vm0, %v1606_v55  ;;  %v604_v52 = vrot.slane %v1826_v48, 1  ;;  %v766_v21 = vrot.slane %v1826_v48, 2 }
 0x123   : > { %v547_v47 = vmax.f32 %v543_v45, 0.0  ;;  %1350 = vmatprep.subr.mxu1 %v1606_v55 }
 0x124   : > { %1351 = vmatpush3.msra.mxu1 %v863_v46 }
 0x125   : > { %v1832_v50 = vsel %vm559_vm3, %v547_v47, 0.0  ;;  %1352 = vmatprep.subr.mxu1 %v1606_v55 }
 0x126   : > { %v605_v53 = vrot.slane %v1832_v50, 1  ;;  %1353 = vmatpush3.msra.mxu1 %v862_v49  ;;  %v767_v19 = vrot.slane %v1832_v50, 2 }
 0x127   : > { %1354 = vmatprep.subr.mxu1 %v1606_v55 }
 0x128   : > { %v606_v57 = vsel %vm603_vm1, %v604_v52, %v605_v53  ;;  %1355 = vmatpush3.msra.mxu1 %v861_v51  ;;  %v768_v22 = vsel %vm765_vm4, %v766_v21, %v767_v19 }
 0x129   : > { %1276 = vmatmul.mubr.f32.vlgmr.msra.gmra.mxu0 %v606_v57  ;;  %1356 = vmatprep.subr.mxu1 %v1606_v55 }
 0x12a   : > { %1314 = vmatpush3.msra.mxu0 %v764_v54  ;;  %1357 = vmatpush3.msra.mxu1 %v860_v56 }
 0x12b   : > { %1315 = vmatprep.subr.mxu0 %v1606_v55  ;;  %1358 = vmatprep.subr.mxu1 %v1606_v55 }
 0x12c   : > { %1316 = vmatpush3.msra.mxu0 %v763_v58  ;;  %1359 = vmatpush3.msra.mxu1 %v859_v59 }
 0x12d   : > { %1317 = vmatprep.subr.mxu0 %v1606_v55  ;;  %1360 = vmatprep.subr.mxu1 %v1606_v55 }
 0x12e   : > { %1318 = vmatpush3.msra.mxu0 %v762_v60  ;;  %1361 = vmatpush3.msra.mxu1 %v858_v61 }
 0x12f   : > { %1319 = vmatprep.subr.mxu0 %v1606_v55  ;;  %1362 = vmatprep.subr.mxu1 %v1606_v55 }
 0x130   : > { %1320 = vmatpush3.msra.mxu0 %v761_v62  ;;  %1363 = vmatpush3.msra.mxu1 %v857_v63 }
 0x131   : > { %1321 = vmatprep.subr.mxu0 %v1606_v55  ;;  %1364 = vmatprep.subr.mxu1 %v1606_v55 }
 0x132   : > { %1322 = vmatpush3.msra.mxu0 %v760_v0  ;;  %1365 = vmatpush3.msra.mxu1 %v856_v1 }
 0x133   : > { %1323 = vmatprep.subr.mxu0 %v1606_v55  ;;  %1366 = vmatprep.subr.mxu1 %v1606_v55 }
 0x134   : > { %1324 = vmatpush3.msra.mxu0 %v759_v2  ;;  %1367 = vmatpush3.msra.mxu1 %v855_v3 }
 0x135   : > { %1325 = vmatprep.subr.mxu0 %v1606_v55  ;;  %1368 = vmatprep.subr.mxu1 %v1606_v55 }
 0x136   : > { %1326 = vmatpush3.msra.mxu0 %v758_v4  ;;  %1369 = vmatpush3.msra.mxu1 %v854_v5 }
 0x137   : > { %1327 = vmatprep.subr.mxu0 %v1606_v55  ;;  %1370 = vmatprep.subr.mxu1 %v1606_v55 }
 0x138   : > { %1328 = vmatpush3.msra.mxu0 %v757_v6  ;;  %1371 = vmatpush3.msra.mxu1 %v853_v7 }
 0x139   : > { %1329 = vmatprep.subr.mxu0 %v1606_v55  ;;  %1372 = vmatprep.subr.mxu1 %v1606_v55 }
 0x13a   : > { %1330 = vmatpush3.msra.mxu0 %v756_v8  ;;  %1373 = vmatpush3.msra.mxu1 %v852_v9 }
 0x13b   : > { %1331 = vmatprep.subr.mxu0 %v1606_v55  ;;  %1374 = vmatprep.subr.mxu1 %v1606_v55 }
 0x13c   : > { %1332 = vmatpush3.msra.mxu0 %v755_v10  ;;  %1375 = vmatpush3.msra.mxu1 %v851_v11 }
 0x13d   : > { %1333 = vmatprep.subr.mxu0 %v1606_v55  ;;  %1376 = vmatprep.subr.mxu1 %v1606_v55 }
 0x13e   : > { %1334 = vmatpush3.msra.mxu0 %v754_v12  ;;  %1377 = vmatpush3.msra.mxu1 %v850_v13 }
 0x13f   : > { %1335 = vmatprep.subr.mxu0 %v1606_v55  ;;  %1378 = vmatprep.subr.mxu1 %v1606_v55 }
 0x140   : > { %1336 = vmatpush3.msra.mxu0 %v753_v14  ;;  %1345 = vmatprep.mubr.msk.f32.mxu0 %vm1607_vm0, %v1606_v55 }
 0x141   : > { %1337 = vmatprep.subr.mxu0 %v1606_v55  ;;  %1379 = vmatpush3.msra.mxu1 %v849_v15 }
 0x142   : > { %1338 = vmatpush3.msra.mxu0 %v752_v16  ;;  %1381 = vmatmul.mubr.f32.vlgmr.msra.gmra.mxu1 %v1813_v25 }
 0x143   : > { %1339 = vmatprep.subr.mxu0 %v1606_v55 }
 0x144   : > { %1340 = vmatpush3.msra.mxu0 %v751_v17 }
 0x145   : > { %1341 = vmatprep.subr.mxu0 %v1606_v55 }
 0x146   : > { %1342 = vmatpush3.msra.mxu0 %v750_v18 }
 0x147   : > { %1343 = vmatprep.subr.mxu0 %v1606_v55  ;;  %v1078_v55 = vld [vmem:[%s1960_s5] ss:$0 sm:$0xff] }
 0x148   : > { %1344 = vmatpush3.msra.mxu0 %v749_v20 }
 0x149   : > { %1346 = vmatmul.mubr.f32.vlgmr.msra.gmra.mxu0 %v768_v22 }
 0x1e1   : > { %v744_v23 = vpop.f32.mrf.mxu1 }
 0x1e3   : > { %v1312_v24 = vpop.f32.mrf.mxu1 }
 0x1e9   : > { %v674_v25 = vpop.f32.mrf.mxu0 }
 0x1ea   : > { %v745_v30 = vadd.f32 %v744_v23, %v674_v25 }
 0x1eb   : > { %v1277_v26 = vpop.f32.mrf.mxu0 }
 0x202   : > { %v944_v27 = vpop.f32.mrf.mxu1 }
 0x203   : > { %v945_v33 = vadd.f32 %v1079_v29, %v944_v27 }
 0x204   : > { %v1382_v28 = vpop.f32.mrf.mxu1 }
 0x209   : > { %v836_v31 = vpop.f32.mrf.mxu0 }
 0x20a   : > { %v840_v32 = vadd.f32 %v836_v31, %v745_v30 }
 0x20b   : > { %v1347_v34 = vpop.f32.mrf.mxu0 }
 0x20c   : > { %v848_v35 = vadd.f32 %v1078_v55, %v840_v32 }
 0x20e   : > { %v948_v36 = vadd.f32 %v945_v33, %v848_v35 }
 0x210   : > { %v949_v37 = vmax.f32 %v948_v36, 0.0 }
 0x212   : > { %950 = vst [vmem:[%s325_s30] sm:$0xff] %v949_v37 }
 0x213   : > { %1529 = shalt.err (!%p1526_p9)
}
 0x214   : > { %s1530_s19 = scalar_lea.hbm %s964_s17, 128  ;;  %s1534_s23 = scalar_lea.hbm %s1962_s7, 256 }
 0x215   : > { %p1531_p12 = scmp.ne.s32.totalorder %s964_s17, %s1530_s19  ;;  %p1535_p5 = scmp.lt.s32.totalorder %s964_s17, %s1962_s7 }
 0x216   : > { %p1536_p3 = scmp.lt.s32.totalorder %s1534_s23, %s1530_s19 }
 0x217   : > { %p1532_p1 = pnand %p1531_p12, %p1969_p10 }
 0x218   : > { %p1537_p4 = por %p1536_p3, %p1535_p5 }
 0x219   : > { %p1533_p2 = pneg %p1532_p1 }
 0x21b   : > { %p1538_p8 = pnand %p1537_p4, %p1533_p2 }
 0x21d   : > { %1541 = shalt.err (!%p1538_p8)
}
 0x21e   : > { %1392 = dma.vmem_to_hbm [thread:$0]  (%p1969_p10), %s967_s8, 128, %s964_s17, %s952_s20  }
 0x21f PF: > { %p1409_p11 = scmp.ge.s32.totalorder %s1600_s29, 2  ;;  %s978_s12 = sand.u32 1, %s1580_s24  }
 0x220   : > { %p1970_p13 = scmp.ne.s32.totalorder %s1965_s13, 0  ;;  %s979_s16 = scalar_lea.sflag [#allocation4], %s978_s12 }
 0x222   : > { %p1402_p0 = pnand %p1409_p11, %p1970_p13 }
 0x224   : > { %p1403_p6 = pneg %p1402_p0 }
 0x226   : > { %1575 = dma.done.wait (%p1403_p6), %s979_s16, 128  }
 0x227   : > { %1577 = vsyncadd (%p1403_p6), %s979_s16, 4294967168  ;;  %s22_s29 = sadd.s32 1, %s1600_s29   ;;  %s1971_s24 = smov %s1584_s25 }
 0x228   : > { %p19_p7 = scmp.ge.s32.totalorder %s22_s29, 4   ;;  %s1972_s25 = smov %s1588_s26 }
 0x229   : > { %s1973_s26 = smov %s1702_s14  ;;  %s1974_s27 = smov %s1596_s28 }
 0x22a   : > { %s1975_s28 = smov %s1977_s9  ;;  %21 = sbr.rel (!%p19_p7) target bundleno = 6 (0x6), region = 94 }
 0x22f   :  { %984 = vsyncpa [#allocation3], 1 }
 0x230   :  { %986 = vsyncpa [#allocation3 + $0x1], 1 }
 0x231   :  { %987 = vsyncpa [#allocation6], 1 }
 0x232   :  { %988 = vsyncpa [#allocation4], 1 }
 0x233   :  { %990 = vsyncpa [#allocation4 + $0x1], 1 }

</bundles_post_ra>
